<compile_context>
chip_gen: v5e
topology: v5e:2x2
jax: 0.10.0
libtpu: 0.0.40
codegen_flags: <defaults>
</compile_context>

<pallas_src>
import jax
import jax.numpy as jnp
from jax.experimental import pallas as pl
from jax.experimental.pallas import tpu as pltpu

KS = 3                                   # kernel size (pad = 1, stride = 1, groups = 1)
BN_EPS = 1e-5                            # PyTorch BatchNorm2d default eps
LANES = 128
_STEP_VMEM_BUDGET = 6 * 1024 * 1024      # per-grid-step working-set target (bytes)
_VMEM_LIMIT_BYTES = 32 * 1024 * 1024     # explicit scoped-VMEM request (< v7x physical)
_STAT_CHUNK = 512                        # rows per chunk for in-kernel reductions


# --------------------------------------------------------------------------- #
# Pass 1: conv + staged bf16 activations + per-block shifted BN statistics.
# --------------------------------------------------------------------------- #
def _conv_stats_kernel(xt_ref, w_ref, conv_ref, mean_ref, m2_ref):
    """One (image, row-tile) block.

    xt_ref:   (1, 1, (TH+KS-1)*W, KS*Cin) bf16   kx-folded, halo'd row tile
    w_ref:    (KS, KS*Cin, Coutp)         bf16   ky-major folded weights
    conv_ref: (1, 1, TH*W, Coutp)         bf16   staged conv activations
    mean_ref: (1, 1, 1, Coutp)            f32    per-block mean
    m2_ref:   (1, 1, 1, Coutp)            f32    per-block centered sum-of-squares
    """
    rows_in = xt_ref.shape[2]
    rows_out = conv_ref.shape[2]
    coutp = w_ref.shape[-1]
    w_img = (rows_in - rows_out) // (KS - 1)      # static image width

    # 3 accumulating MXU dots with K = KS*Cin.  Each ky tap is a contiguous
    # sublane-offset slice of the flat (rows, KS*Cin) tile (no relayout); the
    # offsets are static Python ints (multiples of 8 whenever W % 8 == 0).
    # TODO(synk): for W % 8 != 0 these offsets are sublane-unaligned (correct,
    # slightly slower on the load path).
    acc = jnp.zeros((rows_out, coutp), jnp.float32)
    for ky in range(KS):
        tap = xt_ref[0, 0, ky * w_img: ky * w_img + rows_out, :]
        acc = acc + jnp.dot(tap, w_ref[ky], preferred_element_type=jnp.float32)

    # Stage the activations for the epilogue pass (bf16 halves the HBM stream).
    conv_ref[0, 0] = acc.astype(conv_ref.dtype)

    # Shifted per-block statistics, reduced chunk-wise so no second
    # accumulator-sized f32 temporary is materialized.
    bsum = jnp.zeros((1, coutp), jnp.float32)
    for r0 in range(0, rows_out, _STAT_CHUNK):
        r1 = min(r0 + _STAT_CHUNK, rows_out)
        bsum = bsum + jnp.sum(acc[r0:r1], axis=0, keepdims=True)
    bmean = bsum * (1.0 / rows_out)

    m2 = jnp.zeros((1, coutp), jnp.float32)
    for r0 in range(0, rows_out, _STAT_CHUNK):
        r1 = min(r0 + _STAT_CHUNK, rows_out)
        d = acc[r0:r1] - bmean
        m2 = m2 + jnp.sum(d * d, axis=0, keepdims=True)

    mean_ref[0, 0] = bmean
    m2_ref[0, 0] = m2


# --------------------------------------------------------------------------- #
# Pass 2: pure VPU BatchNorm scale/shift + ReLU epilogue (bf16 in, bf16 out).
# --------------------------------------------------------------------------- #
def _bn_relu_kernel(conv_ref, scale_ref, shift_ref, o_ref):
    y = conv_ref[0, 0].astype(jnp.float32) * scale_ref[...] + shift_ref[...]
    o_ref[0, 0] = jnp.maximum(y, 0.0).astype(o_ref.dtype)


def _pick_tile_h(h_img, w_img, cin3, coutp):
    """Largest divisor of H whose per-step footprint fits the VMEM budget.

    Footprint = double-buffered bf16 input tile + double-buffered bf16 staged
    tile + the single f32 accumulator.  Kept ~<= 6 MiB so it clears v5e's
    16 MiB scoped default and leaves plenty of headroom on v7x's 64 MiB VMEM,
    while giving the v7x megacore multiple parallel grid steps per image.
    """
    best = 1
    for th in range(1, h_img + 1):
        if h_img % th:
            continue
        in_bytes = 2 * (th + KS - 1) * w_img * cin3 * 2
        out_bytes = 2 * th * w_img * coutp * 2
        acc_bytes = th * w_img * coutp * 4
        if in_bytes + out_bytes + acc_bytes <= _STEP_VMEM_BUDGET:
            best = th
    return best


@jax.jit
def conv_relu(x_nchw, weight, gamma, beta):
    """relu(batch_norm(conv2d(x))) with batch statistics (training mode).

    x_nchw: (N, Cin, H, W) f32;  weight: (Cout, Cin, KS, KS) f32;
    gamma/beta: (Cout,) f32.  Returns (N, Cout, H, W) f32.
    """
    n, cin, h_img, w_img = x_nchw.shape
    cout = weight.shape[0]
    pad = KS // 2
    cin3 = KS * cin
    coutp = ((cout + LANES - 1) // LANES) * LANES          # lane-dense channels
    th = _pick_tile_h(h_img, w_img, cin3, coutp)
    nh = h_img // th
    rows_out = th * w_img
    rows_in = (th + KS - 1) * w_img

    # ---- wrapper glue (pure XLA; drops entirely if the model stays NHWC) ----
    # NCHW -> NHWC, bf16 (MXU-native), zero-pad H and W by 1.
    x_pad = jnp.pad(jnp.transpose(x_nchw, (0, 2, 3, 1)).astype(jnp.bfloat16),
                    ((0, 0), (pad, pad), (pad, pad), (0, 0)))
    # Fold the kx taps into channels: x_kx[n, y, x, kx*Cin + c] = x_pad[n, y, x+kx, c].
    # This triples the streamed input (cheap for small Cin) but folds kx into
    # the matmul K dim and removes all wrap/garbage columns from the kernel.
    # TODO(synk): for large Cin keep K = Cin instead (per-tap contiguous flat
    # slices over the W-padded tile with wrap-column masking) to avoid the 3x
    # input blow-up, and/or recompute the conv in pass 2 when Coutp >> Cin.
    x_kx = jnp.concatenate([x_pad[:, :, kx:kx + w_img, :] for kx in range(KS)],
                           axis=-1)                         # (N, H+2, W, 3*Cin)
    # Halo'd row tiles (tile hh covers padded rows [hh*TH, hh*TH + TH + 2)),
    # pre-flattened to (rows, 3*Cin) so the kernel never reshapes.
    x_tiles = jnp.stack([x_kx[:, hh * th: hh * th + th + KS - 1]
                         for hh in range(nh)], axis=1)
    x_tiles = x_tiles.reshape(n, nh, rows_in, cin3)

    # weight (Cout, Cin, KS, KS) -> (ky, kx*Cin + c, Coutp), bf16, Cout padded.
    w_k = jnp.transpose(weight, (2, 3, 1, 0)).reshape(KS, cin3, cout)
    w_k = jnp.pad(w_k, ((0, 0), (0, 0), (0, coutp - cout))).astype(jnp.bfloat16)

    x_spec = pl.BlockSpec((1, 1, rows_in, cin3), lambda i, j: (i, j, 0, 0))
    w_spec = pl.BlockSpec((KS, cin3, coutp), lambda i, j: (0, 0, 0))
    tile_spec = pl.BlockSpec((1, 1, rows_out, coutp), lambda i, j: (i, j, 0, 0))
    stat_spec = pl.BlockSpec((1, 1, 1, coutp), lambda i, j: (i, j, 0, 0))
    chan_spec = pl.BlockSpec((1, coutp), lambda i, j: (0, 0))
    params = pltpu.CompilerParams(
        dimension_semantics=("parallel", "parallel"),
        vmem_limit_bytes=_VMEM_LIMIT_BYTES)

    # ---- pass 1: conv -> staged bf16 activations + per-block shifted stats ----
    conv_bf16, bmean, bm2 = pl.pallas_call(
        _conv_stats_kernel,
        grid=(n, nh),
        in_specs=[x_spec, w_spec],
        out_specs=(tile_spec, stat_spec, stat_spec),
        out_shape=(jax.ShapeDtypeStruct((n, nh, rows_out, coutp), jnp.bfloat16),
                   jax.ShapeDtypeStruct((n, nh, 1, coutp), jnp.float32),
                   jax.ShapeDtypeStruct((n, nh, 1, coutp), jnp.float32)),
        compiler_params=params,
    )(x_tiles, w_k)

    # ---- tiny f32 combine: Welford-style merge of equal-sized blocks ----
    nblk = n * nh
    means = bmean.reshape(nblk, coutp)
    m2s = bm2.reshape(nblk, coutp)
    gmean = jnp.mean(means, axis=0)
    var = (jnp.sum(m2s, axis=0)
           + rows_out * jnp.sum(jnp.square(means - gmean), axis=0)) / (nblk * rows_out)
    gamma_p = jnp.pad(gamma.astype(jnp.float32), (0, coutp - cout))
    beta_p = jnp.pad(beta.astype(jnp.float32), (0, coutp - cout))
    scale = gamma_p * jax.lax.rsqrt(var + BN_EPS)           # biased var, as PyTorch
    shift = beta_p - gmean * scale
    # TODO(synk): running_mean / running_var momentum updates (training-time
    # buffer side effects of nn.BatchNorm2d) are not emitted; the forward
    # output does not depend on them.

    # ---- pass 2: scale/shift + ReLU epilogue over the staged bf16 conv ----
    out_tiles = pl.pallas_call(
        _bn_relu_kernel,
        grid=(n, nh),
        in_specs=[tile_spec, chan_spec, chan_spec],
        out_specs=tile_spec,
        out_shape=jax.ShapeDtypeStruct((n, nh, rows_out, coutp), jnp.bfloat16),
        compiler_params=params,
    )(conv_bf16, scale.reshape(1, coutp), shift.reshape(1, coutp))

    # ---- wrapper glue: drop channel padding, back to NCHW f32 (reads bf16) ----
    out_nhwc = out_tiles.reshape(n, h_img, w_img, coutp)[..., :cout]
    return jnp.transpose(out_nhwc, (0, 3, 1, 2)).astype(jnp.float32)


def conv_relu_reference(x, weight, gamma, beta, *, match_kernel_rounding):
    """Pure-XLA reference.

    match_kernel_rounding=True mimics the kernel's bf16 rounding points
    (inputs/weights, staged conv, final store) so the comparison isolates the
    kernel's math; False is the strict f32 forward of the PyTorch module.
    """
    if match_kernel_rounding:
        x = x.astype(jnp.bfloat16).astype(jnp.float32)
        weight = weight.astype(jnp.bfloat16).astype(jnp.float32)
    conv = jax.lax.conv_general_dilated(
        x, weight, window_strides=(1, 1), padding="SAME",
        dimension_numbers=("NCHW", "OIHW", "NCHW"),
        precision=jax.lax.Precision.HIGHEST)
    mean = jnp.mean(conv, axis=(0, 2, 3), keepdims=True)
    var = jnp.mean(jnp.square(conv - mean), axis=(0, 2, 3), keepdims=True)
    scale = gamma.reshape(1, -1, 1, 1) * jax.lax.rsqrt(var + BN_EPS)
    shift = beta.reshape(1, -1, 1, 1) - mean * scale
    if match_kernel_rounding:
        conv = conv.astype(jnp.bfloat16).astype(jnp.float32)
    y = jnp.maximum(conv * scale + shift, 0.0)
    if match_kernel_rounding:
        y = y.astype(jnp.bfloat16).astype(jnp.float32)
    return y


if __name__ == "__main__":
    key = jax.random.PRNGKey(0)
    k_x, k_w, k_g, k_b = jax.random.split(key, 4)

    N, CIN, H, W = 2, 4, 16, 16
    COUT = 8

    x = jax.random.normal(k_x, (N, CIN, H, W), dtype=jnp.float32)
    bound = 1.0 / (CIN * KS * KS) ** 0.5        # PyTorch Conv2d default init range
    weight = jax.random.uniform(k_w, (COUT, CIN, KS, KS), dtype=jnp.float32,
                                minval=-bound, maxval=bound)
    gamma = jax.random.uniform(k_g, (COUT,), dtype=jnp.float32,
                               minval=0.5, maxval=1.5)
    beta = 0.1 * jax.random.normal(k_b, (COUT,), dtype=jnp.float32)

    out = jax.block_until_ready(conv_relu(x, weight, gamma, beta))
    assert out.shape == (N, COUT, H, W)
    assert bool(jnp.all(jnp.isfinite(out)))

    # Exact-math check: the reference mimics the kernel's bf16 rounding points,
    # so the tolerance only absorbs f32 accumulation-order differences and rare
    # 1-ulp bf16 tie flips.
    ref_m = conv_relu_reference(x, weight, gamma, beta, match_kernel_rounding=True)
    err_m = float(jnp.max(jnp.abs(out - ref_m) - (5e-3 + 1.2e-2 * jnp.abs(ref_m))))
    assert err_m <= 0.0, err_m

    # Honest precision check against the strict f32 forward: errors are bounded
    # by the bf16 MXU inputs and bf16 staging/store (~2^-8 relative) applied to
    # O(1) normalized activations.
    ref_f = conv_relu_reference(x, weight, gamma, beta, match_kernel_rounding=False)
    err_f = float(jnp.max(jnp.abs(out - ref_f) - (4e-2 + 5e-2 * jnp.abs(ref_f))))
    assert err_f <= 0.0, err_f

    print("KERNEL_OK")
</pallas_src>

<mosaic_0001>
module attributes {stable_mosaic.version = 11 : i64} {
  func.func @_conv_stats_kernel(%arg0: i32, %arg1: i32, %arg2: memref<1x1x288x12xbf16, #tpu.memory_space<vmem>>, %arg3: memref<3x12x128xbf16, #tpu.memory_space<vmem>>, %arg4: memref<1x1x256x128xbf16, #tpu.memory_space<vmem>>, %arg5: memref<1x1x1x128xf32, #tpu.memory_space<vmem>>, %arg6: memref<1x1x1x128xf32, #tpu.memory_space<vmem>>) attributes {dimension_semantics = [#tpu.dimension_semantics<parallel>, #tpu.dimension_semantics<parallel>], iteration_bounds = array<i64: 2, 1>, scalar_prefetch = 0 : i64, scratch_operands = 0 : i64, tpu.core_type = #tpu.core_type<tc>, window_params = [{transform_indices = @transform_0, window_bounds = array<i64: 1, 1, 288, 12>}, {pipeline_mode = #tpu.pipeline_mode<synchronous>, transform_indices = @transform_1, window_bounds = array<i64: 3, 12, 128>}, {transform_indices = @transform_2, window_bounds = array<i64: 1, 1, 256, 128>}, {transform_indices = @transform_3, window_bounds = array<i64: 1, 1, 1, 128>}, {transform_indices = @transform_4, window_bounds = array<i64: 1, 1, 1, 128>}]} {
    %cst = arith.constant 0.000000e+00 : f32
    %0 = vector.broadcast %cst : f32 to vector<256x128xf32>
    %c0 = arith.constant 0 : index
    %c0_0 = arith.constant 0 : index
    %c0_1 = arith.constant 0 : index
    %c0_2 = arith.constant 0 : index
    %1 = vector.load %arg2[%c0, %c0_0, %c0_1, %c0_2] : memref<1x1x288x12xbf16, #tpu.memory_space<vmem>>, vector<1x1x256x12xbf16>
    %2 = vector.shape_cast %1 : vector<1x1x256x12xbf16> to vector<256x12xbf16>
    %c0_3 = arith.constant 0 : index
    %c0_4 = arith.constant 0 : index
    %c0_5 = arith.constant 0 : index
    %3 = vector.load %arg3[%c0_3, %c0_4, %c0_5] : memref<3x12x128xbf16, #tpu.memory_space<vmem>>, vector<1x12x128xbf16>
    %4 = vector.shape_cast %3 : vector<1x12x128xbf16> to vector<12x128xbf16>
    %cst_6 = arith.constant dense<0.000000e+00> : vector<256x128xf32>
    %5 = tpu.matmul %2, %4, %cst_6 {dimension_numbers = #tpu.dot_dimension_numbers<[1], [0], [0], [1], [0, 0, 1, 1], [], []>} : vector<256x12xbf16>, vector<12x128xbf16>, vector<256x128xf32> -> vector<256x128xf32>
    %6 = arith.addf %0, %5 : vector<256x128xf32>
    %c0_7 = arith.constant 0 : index
    %c0_8 = arith.constant 0 : index
    %c16 = arith.constant 16 : index
    %c0_9 = arith.constant 0 : index
    %7 = vector.load %arg2[%c0_7, %c0_8, %c16, %c0_9] : memref<1x1x288x12xbf16, #tpu.memory_space<vmem>>, vector<1x1x256x12xbf16>
    %8 = vector.shape_cast %7 : vector<1x1x256x12xbf16> to vector<256x12xbf16>
    %c1 = arith.constant 1 : index
    %c0_10 = arith.constant 0 : index
    %c0_11 = arith.constant 0 : index
    %9 = vector.load %arg3[%c1, %c0_10, %c0_11] : memref<3x12x128xbf16, #tpu.memory_space<vmem>>, vector<1x12x128xbf16>
    %10 = vector.shape_cast %9 : vector<1x12x128xbf16> to vector<12x128xbf16>
    %cst_12 = arith.constant dense<0.000000e+00> : vector<256x128xf32>
    %11 = tpu.matmul %8, %10, %cst_12 {dimension_numbers = #tpu.dot_dimension_numbers<[1], [0], [0], [1], [0, 0, 1, 1], [], []>} : vector<256x12xbf16>, vector<12x128xbf16>, vector<256x128xf32> -> vector<256x128xf32>
    %12 = arith.addf %6, %11 : vector<256x128xf32>
    %c0_13 = arith.constant 0 : index
    %c0_14 = arith.constant 0 : index
    %c32 = arith.constant 32 : index
    %c0_15 = arith.constant 0 : index
    %13 = vector.load %arg2[%c0_13, %c0_14, %c32, %c0_15] : memref<1x1x288x12xbf16, #tpu.memory_space<vmem>>, vector<1x1x256x12xbf16>
    %14 = vector.shape_cast %13 : vector<1x1x256x12xbf16> to vector<256x12xbf16>
    %c2 = arith.constant 2 : index
    %c0_16 = arith.constant 0 : index
    %c0_17 = arith.constant 0 : index
    %15 = vector.load %arg3[%c2, %c0_16, %c0_17] : memref<3x12x128xbf16, #tpu.memory_space<vmem>>, vector<1x12x128xbf16>
    %16 = vector.shape_cast %15 : vector<1x12x128xbf16> to vector<12x128xbf16>
    %cst_18 = arith.constant dense<0.000000e+00> : vector<256x128xf32>
    %17 = tpu.matmul %14, %16, %cst_18 {dimension_numbers = #tpu.dot_dimension_numbers<[1], [0], [0], [1], [0, 0, 1, 1], [], []>} : vector<256x12xbf16>, vector<12x128xbf16>, vector<256x128xf32> -> vector<256x128xf32>
    %18 = arith.addf %12, %17 : vector<256x128xf32>
    %19 = arith.truncf %18 : vector<256x128xf32> to vector<256x128xbf16>
    %c0_19 = arith.constant 0 : index
    %c0_20 = arith.constant 0 : index
    %c0_21 = arith.constant 0 : index
    %c0_22 = arith.constant 0 : index
    %20 = vector.load %arg4[%c0_19, %c0_20, %c0_21, %c0_22] : memref<1x1x256x128xbf16, #tpu.memory_space<vmem>>, vector<1x1x256x128xbf16>
    %21 = vector.shape_cast %20 : vector<1x1x256x128xbf16> to vector<256x128xbf16>
    %22 = vector.shape_cast %19 : vector<256x128xbf16> to vector<1x1x256x128xbf16>
    tpu.vector_store %arg4[%c0_19, %c0_20, %c0_21, %c0_22], %22 {strides = array<i32>} : memref<1x1x256x128xbf16, #tpu.memory_space<vmem>>, vector<1x1x256x128xbf16>,
    %cst_23 = arith.constant 0.000000e+00 : f32
    %23 = vector.broadcast %cst_23 : f32 to vector<1x128xf32>
    %cst_24 = arith.constant dense<0.000000e+00> : vector<128xf32>
    %24 = vector.multi_reduction <add>, %18, %cst_24 [0] : vector<256x128xf32> to vector<128xf32>
    %25 = vector.shape_cast %24 : vector<128xf32> to vector<1x128xf32>
    %26 = arith.addf %23, %25 : vector<1x128xf32>
    %cst_25 = arith.constant 3.906250e-03 : f32
    %27 = vector.broadcast %cst_25 : f32 to vector<1x128xf32>
    %28 = arith.mulf %26, %27 : vector<1x128xf32>
    %cst_26 = arith.constant 0.000000e+00 : f32
    %29 = vector.broadcast %cst_26 : f32 to vector<1x128xf32>
    %30 = vector.broadcast %28 : vector<1x128xf32> to vector<256x128xf32>
    %31 = arith.subf %18, %30 : vector<256x128xf32>
    %32 = arith.mulf %31, %31 : vector<256x128xf32>
    %cst_27 = arith.constant dense<0.000000e+00> : vector<128xf32>
    %33 = vector.multi_reduction <add>, %32, %cst_27 [0] : vector<256x128xf32> to vector<128xf32>
    %34 = vector.shape_cast %33 : vector<128xf32> to vector<1x128xf32>
    %35 = arith.addf %29, %34 : vector<1x128xf32>
    %c0_28 = arith.constant 0 : index
    %c0_29 = arith.constant 0 : index
    %c0_30 = arith.constant 0 : index
    %c0_31 = arith.constant 0 : index
    %36 = vector.load %arg5[%c0_28, %c0_29, %c0_30, %c0_31] : memref<1x1x1x128xf32, #tpu.memory_space<vmem>>, vector<1x1x1x128xf32>
    %37 = vector.shape_cast %36 : vector<1x1x1x128xf32> to vector<1x128xf32>
    %38 = vector.shape_cast %28 : vector<1x128xf32> to vector<1x1x1x128xf32>
    tpu.vector_store %arg5[%c0_28, %c0_29, %c0_30, %c0_31], %38 {strides = array<i32>} : memref<1x1x1x128xf32, #tpu.memory_space<vmem>>, vector<1x1x1x128xf32>,
    %c0_32 = arith.constant 0 : index
    %c0_33 = arith.constant 0 : index
    %c0_34 = arith.constant 0 : index
    %c0_35 = arith.constant 0 : index
    %39 = vector.load %arg6[%c0_32, %c0_33, %c0_34, %c0_35] : memref<1x1x1x128xf32, #tpu.memory_space<vmem>>, vector<1x1x1x128xf32>
    %40 = vector.shape_cast %39 : vector<1x1x1x128xf32> to vector<1x128xf32>
    %41 = vector.shape_cast %35 : vector<1x128xf32> to vector<1x1x1x128xf32>
    tpu.vector_store %arg6[%c0_32, %c0_33, %c0_34, %c0_35], %41 {strides = array<i32>} : memref<1x1x1x128xf32, #tpu.memory_space<vmem>>, vector<1x1x1x128xf32>,
    return
  }
  func.func @transform_0(%arg0: i32, %arg1: i32) -> (i32, i32, i32, i32) {
    %c0_i32 = arith.constant 0 : i32
    %c0_i32_0 = arith.constant 0 : i32
    %c0_i32_1 = arith.constant 0 : i32
    return %arg0, %arg1, %c0_i32, %c0_i32_0 : i32, i32, i32, i32
  }
  func.func @transform_1(%arg0: i32, %arg1: i32) -> (i32, i32, i32) {
    %c0_i32 = arith.constant 0 : i32
    %c0_i32_0 = arith.constant 0 : i32
    %c0_i32_1 = arith.constant 0 : i32
    %c0_i32_2 = arith.constant 0 : i32
    return %c0_i32, %c0_i32_0, %c0_i32_1 : i32, i32, i32
  }
  func.func @transform_2(%arg0: i32, %arg1: i32) -> (i32, i32, i32, i32) {
    %c0_i32 = arith.constant 0 : i32
    %c0_i32_0 = arith.constant 0 : i32
    %c0_i32_1 = arith.constant 0 : i32
    return %arg0, %arg1, %c0_i32, %c0_i32_0 : i32, i32, i32, i32
  }
  func.func @transform_3(%arg0: i32, %arg1: i32) -> (i32, i32, i32, i32) {
    %c0_i32 = arith.constant 0 : i32
    %c0_i32_0 = arith.constant 0 : i32
    %c0_i32_1 = arith.constant 0 : i32
    return %arg0, %arg1, %c0_i32, %c0_i32_0 : i32, i32, i32, i32
  }
  func.func @transform_4(%arg0: i32, %arg1: i32) -> (i32, i32, i32, i32) {
    %c0_i32 = arith.constant 0 : i32
    %c0_i32_0 = arith.constant 0 : i32
    %c0_i32_1 = arith.constant 0 : i32
    return %arg0, %arg1, %c0_i32, %c0_i32_0 : i32, i32, i32, i32
  }
}

module attributes {stable_mosaic.version = 11 : i64} {
  func.func @_bn_relu_kernel(%arg0: i32, %arg1: i32, %arg2: memref<1x1x256x128xbf16, #tpu.memory_space<vmem>>, %arg3: memref<1x128xf32, #tpu.memory_space<vmem>>, %arg4: memref<1x128xf32, #tpu.memory_space<vmem>>, %arg5: memref<1x1x256x128xbf16, #tpu.memory_space<vmem>>) attributes {dimension_semantics = [#tpu.dimension_semantics<parallel>, #tpu.dimension_semantics<parallel>], iteration_bounds = array<i64: 2, 1>, scalar_prefetch = 0 : i64, scratch_operands = 0 : i64, tpu.core_type = #tpu.core_type<tc>, window_params = [{transform_indices = @transform_0, window_bounds = array<i64: 1, 1, 256, 128>}, {pipeline_mode = #tpu.pipeline_mode<synchronous>, transform_indices = @transform_1, window_bounds = array<i64: 1, 128>}, {pipeline_mode = #tpu.pipeline_mode<synchronous>, transform_indices = @transform_2, window_bounds = array<i64: 1, 128>}, {transform_indices = @transform_3, window_bounds = array<i64: 1, 1, 256, 128>}]} {
    %c0 = arith.constant 0 : index
    %c0_0 = arith.constant 0 : index
    %c0_1 = arith.constant 0 : index
    %c0_2 = arith.constant 0 : index
    %0 = vector.load %arg2[%c0, %c0_0, %c0_1, %c0_2] : memref<1x1x256x128xbf16, #tpu.memory_space<vmem>>, vector<1x1x256x128xbf16>
    %1 = vector.shape_cast %0 : vector<1x1x256x128xbf16> to vector<256x128xbf16>
    %2 = arith.extf %1 : vector<256x128xbf16> to vector<256x128xf32>
    %c0_3 = arith.constant 0 : index
    %c0_4 = arith.constant 0 : index
    %3 = vector.load %arg3[%c0_3, %c0_4] : memref<1x128xf32, #tpu.memory_space<vmem>>, vector<1x128xf32>
    %4 = vector.broadcast %3 : vector<1x128xf32> to vector<256x128xf32>
    %5 = arith.mulf %2, %4 : vector<256x128xf32>
    %c0_5 = arith.constant 0 : index
    %c0_6 = arith.constant 0 : index
    %6 = vector.load %arg4[%c0_5, %c0_6] : memref<1x128xf32, #tpu.memory_space<vmem>>, vector<1x128xf32>
    %7 = vector.broadcast %6 : vector<1x128xf32> to vector<256x128xf32>
    %8 = arith.addf %5, %7 : vector<256x128xf32>
    %cst = arith.constant 0.000000e+00 : f32
    %9 = vector.broadcast %cst : f32 to vector<256x128xf32>
    %10 = arith.maximumf %8, %9 : vector<256x128xf32>
    %11 = arith.truncf %10 : vector<256x128xf32> to vector<256x128xbf16>
    %c0_7 = arith.constant 0 : index
    %c0_8 = arith.constant 0 : index
    %c0_9 = arith.constant 0 : index
    %c0_10 = arith.constant 0 : index
    %12 = vector.load %arg5[%c0_7, %c0_8, %c0_9, %c0_10] : memref<1x1x256x128xbf16, #tpu.memory_space<vmem>>, vector<1x1x256x128xbf16>
    %13 = vector.shape_cast %12 : vector<1x1x256x128xbf16> to vector<256x128xbf16>
    %14 = vector.shape_cast %11 : vector<256x128xbf16> to vector<1x1x256x128xbf16>
    tpu.vector_store %arg5[%c0_7, %c0_8, %c0_9, %c0_10], %14 {strides = array<i32>} : memref<1x1x256x128xbf16, #tpu.memory_space<vmem>>, vector<1x1x256x128xbf16>,
    return
  }
  func.func @transform_0(%arg0: i32, %arg1: i32) -> (i32, i32, i32, i32) {
    %c0_i32 = arith.constant 0 : i32
    %c0_i32_0 = arith.constant 0 : i32
    %c0_i32_1 = arith.constant 0 : i32
    return %arg0, %arg1, %c0_i32, %c0_i32_0 : i32, i32, i32, i32
  }
  func.func @transform_1(%arg0: i32, %arg1: i32) -> (i32, i32) {
    %c0_i32 = arith.constant 0 : i32
    %c0_i32_0 = arith.constant 0 : i32
    %c0_i32_1 = arith.constant 0 : i32
    return %c0_i32, %c0_i32_0 : i32, i32
  }
  func.func @transform_2(%arg0: i32, %arg1: i32) -> (i32, i32) {
    %c0_i32 = arith.constant 0 : i32
    %c0_i32_0 = arith.constant 0 : i32
    %c0_i32_1 = arith.constant 0 : i32
    return %c0_i32, %c0_i32_0 : i32, i32
  }
  func.func @transform_3(%arg0: i32, %arg1: i32) -> (i32, i32, i32, i32) {
    %c0_i32 = arith.constant 0 : i32
    %c0_i32_0 = arith.constant 0 : i32
    %c0_i32_1 = arith.constant 0 : i32
    return %arg0, %arg1, %c0_i32, %c0_i32_0 : i32, i32, i32, i32
  }
}

</mosaic_0001>

<bundles_post_ra>
// kernel: conv_relu.3
= control target key start
LH: loop header
LB: loop body
LE: loop exit
PB: predicated region body
PF: predicated region fallthrough
CT: control target
= control target key end

     0   :  { %s788_s12 = smov 0   ;;  %s790_s13 = smov 0   ;;  %s938_s0 = inlined_call_operand.vmem [shape: bf16[2,1,256,128], index: 0, kind: input, shape index: {}]   ;;  %s939_s1 = inlined_call_operand.vmem [shape: f32[1,128], index: 1, kind: input, shape index: {}]   ;;  %s940_s2 = inlined_call_operand.vmem [shape: f32[1,128], index: 2, kind: input, shape index: {}]   ;;  %s941_s3 = inlined_call_operand.vmem [shape: bf16[2,1,256,128], index: 3, kind: output, shape index: {}]  }
   0x1   :  { %s792_s14 = smov 0  }
   0x2 LB: > { %s25_s15 = sadd.s32 1, %s762_s13  ;;  %p535_p0 = scmp.ge.s32.totalorder %s766_s14, 1  ;;  %s766_s14 = sphi %s792_s14, %s13_s14   ;;  %s762_s13 = sphi %s790_s13, %s943_s13   ;;  %s758_s12 = sphi %s788_s12, %s942_s12  }
   0x3   : > { %p27_p1 = scmp.ge.s32.totalorder %s25_s15, 2  ;;  %p157_p2 = scmp.lt.s32.totalorder %s766_s14, 3 }
   0x5   : > { %s945_s15 = smov (%p27_p1, %s25_s15), 0  ;;  %p158_p3 = pnand %p535_p0, %p157_p2 }
   0x6   : > { %p189_p4 = scmp.lt.s32.totalorder (!%p158_p3), %s758_s12, 1 }
   0x7   : > { %161 = sbr.rel (%p158_p3) target bundleno = 58 (0x3a), region = 32 }
   0xc   : > { %s947_s12 = smov (!%p189_p4, %s758_s12), 1  ;;  %v819_v0 = vld [vmem:[%s939_s1] ss:$0 sm:$0xff] }
   0xd   : > { %s542_s16 = sshll.u32 %s947_s12, 7  ;;  %v827_v6 = vld [vmem:[%s940_s2] ss:$0 sm:$0xff] }
   0xe   : > { %s814_s19 = scalar_lea.vmem %s938_s0, %s542_s16  ;;  %s853_s26 = scalar_lea.vmem %s941_s3, %s542_s16 }
   0xf   : > { %v545_v1 = vld [vmem:[%s814_s19] sm:$0xff]   ;;  %v688_v2 = vld [vmem:[%s814_s19 + $0x8] sm:$0xff]   ;;  %v689_v3 = vld [vmem:[%s814_s19 + $0x10] sm:$0xff]  }
  0x10   : > { %v546_v4 = vunpack.c.l.bf16 %v545_v1  ;;  %v547_v5 = vunpack.c.h.bf16 %v545_v1  ;;  %v550_v7 = vunpack.c.l.bf16 %v688_v2  ;;  %v551_v8 = vunpack.c.h.bf16 %v688_v2  ;;  %v690_v9 = vld [vmem:[%s814_s19 + $0x18] sm:$0xff]   ;;  %v691_v30 = vld [vmem:[%s814_s19 + $0x20] sm:$0xff]   ;;  %v692_v35 = vld [vmem:[%s814_s19 + $0x28] sm:$0xff]  }
  0x11   : > { %v554_v10 = vunpack.c.l.bf16 %v689_v3  ;;  %v555_v11 = vunpack.c.h.bf16 %v689_v3  ;;  %v558_v12 = vunpack.c.l.bf16 %v690_v9  ;;  %v559_v13 = vunpack.c.h.bf16 %v690_v9  ;;  %v693_v40 = vld [vmem:[%s814_s19 + $0x30] sm:$0xff]   ;;  %v694_v45 = vld [vmem:[%s814_s19 + $0x38] sm:$0xff]   ;;  %v695_v3 = vld [vmem:[%s814_s19 + $0x40] sm:$0xff]  }
  0x12   : > { %v275_v14 = vmul.f32 %v819_v0, %v546_v4  ;;  %v276_v15 = vmul.f32 %v819_v0, %v547_v5  ;;  %v277_v16 = vmul.f32 %v819_v0, %v550_v7  ;;  %v278_v17 = vmul.f32 %v819_v0, %v551_v8 }
  0x13   : > { %v279_v18 = vmul.f32 %v819_v0, %v554_v10  ;;  %v280_v19 = vmul.f32 %v819_v0, %v555_v11  ;;  %v281_v20 = vmul.f32 %v819_v0, %v558_v12  ;;  %v282_v21 = vmul.f32 %v819_v0, %v559_v13  ;;  %v696_v13 = vld [vmem:[%s814_s19 + $0x48] sm:$0xff]  }
  0x14   : > { %v311_v22 = vadd.f32 %v827_v6, %v275_v14  ;;  %v312_v23 = vadd.f32 %v827_v6, %v276_v15  ;;  %v313_v24 = vadd.f32 %v827_v6, %v277_v16  ;;  %v314_v25 = vadd.f32 %v827_v6, %v278_v17 }
  0x15   : > { %v315_v26 = vadd.f32 %v827_v6, %v279_v18  ;;  %v316_v27 = vadd.f32 %v827_v6, %v280_v19  ;;  %v317_v28 = vadd.f32 %v827_v6, %v281_v20  ;;  %v318_v29 = vadd.f32 %v827_v6, %v282_v21  ;;  %v697_v18 = vld [vmem:[%s814_s19 + $0x50] sm:$0xff]  }
  0x16   : > { %v343_v31 = vmax.f32 %v311_v22, 0.0  ;;  %v344_v32 = vmax.f32 %v312_v23, 0.0  ;;  %v345_v33 = vmax.f32 %v313_v24, 0.0  ;;  %v346_v34 = vmax.f32 %v314_v25, 0.0  ;;  %v698_v23 = vld [vmem:[%s814_s19 + $0x58] sm:$0xff]  }
  0x17   : > { %v347_v36 = vmax.f32 %v315_v26, 0.0  ;;  %v348_v37 = vmax.f32 %v316_v27, 0.0  ;;  %v349_v38 = vmax.f32 %v317_v28, 0.0  ;;  %v350_v39 = vmax.f32 %v318_v29, 0.0 }
  0x18   : > { %v611_v41 = vpack.c.bf16 %v344_v32, %v343_v31  ;;  %v616_v42 = vpack.c.bf16 %v346_v34, %v345_v33  ;;  %v562_v43 = vunpack.c.l.bf16 %v691_v30  ;;  %v563_v44 = vunpack.c.h.bf16 %v691_v30 }
  0x19   : > { %v621_v46 = vpack.c.bf16 %v348_v37, %v347_v36  ;;  %v626_v47 = vpack.c.bf16 %v350_v39, %v349_v38  ;;  %v566_v48 = vunpack.c.l.bf16 %v692_v35  ;;  %v567_v49 = vunpack.c.h.bf16 %v692_v35 }
  0x1a   : > { %612 = vst [vmem:[%s853_s26] sm:$0xff] %v611_v41   ;;  %v283_v50 = vmul.f32 %v819_v0, %v562_v43  ;;  %v284_v51 = vmul.f32 %v819_v0, %v563_v44  ;;  %v570_v52 = vunpack.c.l.bf16 %v693_v40  ;;  %v571_v53 = vunpack.c.h.bf16 %v693_v40  ;;  %v699_v40 = vld [vmem:[%s814_s19 + $0x60] sm:$0xff]  }
  0x1b   : > { %703 = vst [vmem:[%s853_s26 + $0x8] sm:$0xff] %v616_v42   ;;  %v285_v54 = vmul.f32 %v819_v0, %v566_v48  ;;  %v286_v55 = vmul.f32 %v819_v0, %v567_v49  ;;  %v574_v56 = vunpack.c.l.bf16 %v694_v45  ;;  %v575_v57 = vunpack.c.h.bf16 %v694_v45 }
  0x1c   : > { %704 = vst [vmem:[%s853_s26 + $0x10] sm:$0xff] %v621_v46   ;;  %v319_v58 = vadd.f32 %v827_v6, %v283_v50  ;;  %v320_v59 = vadd.f32 %v827_v6, %v284_v51  ;;  %v287_v60 = vmul.f32 %v819_v0, %v570_v52  ;;  %v288_v61 = vmul.f32 %v819_v0, %v571_v53  ;;  %v700_v53 = vld [vmem:[%s814_s19 + $0x68] sm:$0xff]  }
  0x1d   : > { %705 = vst [vmem:[%s853_s26 + $0x18] sm:$0xff] %v626_v47   ;;  %v321_v62 = vadd.f32 %v827_v6, %v285_v54  ;;  %v322_v63 = vadd.f32 %v827_v6, %v286_v55  ;;  %v289_v1 = vmul.f32 %v819_v0, %v574_v56  ;;  %v290_v2 = vmul.f32 %v819_v0, %v575_v57 }
  0x1e   : > { %v351_v4 = vmax.f32 %v319_v58, 0.0  ;;  %v352_v5 = vmax.f32 %v320_v59, 0.0  ;;  %v323_v7 = vadd.f32 %v827_v6, %v287_v60  ;;  %v324_v8 = vadd.f32 %v827_v6, %v288_v61  ;;  %v701_v58 = vld [vmem:[%s814_s19 + $0x70] sm:$0xff]  }
  0x1f   : > { %v353_v9 = vmax.f32 %v321_v62, 0.0  ;;  %v354_v10 = vmax.f32 %v322_v63, 0.0  ;;  %v325_v11 = vadd.f32 %v827_v6, %v289_v1  ;;  %v326_v12 = vadd.f32 %v827_v6, %v290_v2  ;;  %v702_v63 = vld [vmem:[%s814_s19 + $0x78] sm:$0xff]  }
  0x20   : > { %v631_v14 = vpack.c.bf16 %v352_v5, %v351_v4  ;;  %v355_v15 = vmax.f32 %v323_v7, 0.0  ;;  %v356_v16 = vmax.f32 %v324_v8, 0.0  ;;  %v578_v17 = vunpack.c.l.bf16 %v695_v3 }
  0x21   : > { %v636_v19 = vpack.c.bf16 %v354_v10, %v353_v9  ;;  %v357_v20 = vmax.f32 %v325_v11, 0.0  ;;  %v358_v21 = vmax.f32 %v326_v12, 0.0  ;;  %v579_v22 = vunpack.c.h.bf16 %v695_v3 }
  0x22   : > { %706 = vst [vmem:[%s853_s26 + $0x20] sm:$0xff] %v631_v14   ;;  %v641_v24 = vpack.c.bf16 %v356_v16, %v355_v15  ;;  %v291_v25 = vmul.f32 %v819_v0, %v578_v17  ;;  %v582_v26 = vunpack.c.l.bf16 %v696_v13  ;;  %v583_v27 = vunpack.c.h.bf16 %v696_v13 }
  0x23   : > { %707 = vst [vmem:[%s853_s26 + $0x28] sm:$0xff] %v636_v19   ;;  %v646_v28 = vpack.c.bf16 %v358_v21, %v357_v20  ;;  %v292_v29 = vmul.f32 %v819_v0, %v579_v22  ;;  %v586_v30 = vunpack.c.l.bf16 %v697_v18  ;;  %v587_v31 = vunpack.c.h.bf16 %v697_v18 }
  0x24   : > { %708 = vst [vmem:[%s853_s26 + $0x30] sm:$0xff] %v641_v24   ;;  %v327_v32 = vadd.f32 %v827_v6, %v291_v25  ;;  %v293_v33 = vmul.f32 %v819_v0, %v582_v26  ;;  %v294_v34 = vmul.f32 %v819_v0, %v583_v27  ;;  %v590_v35 = vunpack.c.l.bf16 %v698_v23 }
  0x25   : > { %709 = vst [vmem:[%s853_s26 + $0x38] sm:$0xff] %v646_v28   ;;  %v328_v36 = vadd.f32 %v827_v6, %v292_v29  ;;  %v295_v37 = vmul.f32 %v819_v0, %v586_v30  ;;  %v296_v38 = vmul.f32 %v819_v0, %v587_v31  ;;  %v591_v39 = vunpack.c.h.bf16 %v698_v23 }
  0x26   : > { %v359_v41 = vmax.f32 %v327_v32, 0.0  ;;  %v329_v42 = vadd.f32 %v827_v6, %v293_v33  ;;  %v330_v43 = vadd.f32 %v827_v6, %v294_v34  ;;  %v297_v44 = vmul.f32 %v819_v0, %v590_v35 }
  0x27   : > { %v360_v45 = vmax.f32 %v328_v36, 0.0  ;;  %v331_v46 = vadd.f32 %v827_v6, %v295_v37  ;;  %v332_v47 = vadd.f32 %v827_v6, %v296_v38  ;;  %v298_v48 = vmul.f32 %v819_v0, %v591_v39 }
  0x28   : > { %v361_v49 = vmax.f32 %v329_v42, 0.0  ;;  %v362_v50 = vmax.f32 %v330_v43, 0.0  ;;  %v333_v51 = vadd.f32 %v827_v6, %v297_v44  ;;  %v594_v52 = vunpack.c.l.bf16 %v699_v40 }
  0x29   : > { %v651_v54 = vpack.c.bf16 %v360_v45, %v359_v41  ;;  %v363_v55 = vmax.f32 %v331_v46, 0.0  ;;  %v364_v56 = vmax.f32 %v332_v47, 0.0  ;;  %v334_v57 = vadd.f32 %v827_v6, %v298_v48 }
  0x2a   : > { %v656_v59 = vpack.c.bf16 %v362_v50, %v361_v49  ;;  %v365_v60 = vmax.f32 %v333_v51, 0.0  ;;  %v595_v61 = vunpack.c.h.bf16 %v699_v40  ;;  %v299_v62 = vmul.f32 %v819_v0, %v594_v52 }
  0x2b   : > { %710 = vst [vmem:[%s853_s26 + $0x40] sm:$0xff] %v651_v54   ;;  %v661_v1 = vpack.c.bf16 %v364_v56, %v363_v55  ;;  %v366_v2 = vmax.f32 %v334_v57, 0.0  ;;  %v598_v3 = vunpack.c.l.bf16 %v700_v53  ;;  %v599_v4 = vunpack.c.h.bf16 %v700_v53 }
  0x2c   : > { %711 = vst [vmem:[%s853_s26 + $0x48] sm:$0xff] %v656_v59   ;;  %v300_v5 = vmul.f32 %v819_v0, %v595_v61  ;;  %v335_v7 = vadd.f32 %v827_v6, %v299_v62  ;;  %v602_v8 = vunpack.c.l.bf16 %v701_v58  ;;  %v603_v9 = vunpack.c.h.bf16 %v701_v58 }
  0x2d   : > { %712 = vst [vmem:[%s853_s26 + $0x50] sm:$0xff] %v661_v1   ;;  %v666_v10 = vpack.c.bf16 %v366_v2, %v365_v60  ;;  %v301_v11 = vmul.f32 %v819_v0, %v598_v3  ;;  %v302_v12 = vmul.f32 %v819_v0, %v599_v4  ;;  %v606_v13 = vunpack.c.l.bf16 %v702_v63 }
  0x2e   : > { %v336_v14 = vadd.f32 %v827_v6, %v300_v5  ;;  %v367_v15 = vmax.f32 %v335_v7, 0.0  ;;  %v303_v16 = vmul.f32 %v819_v0, %v602_v8  ;;  %v304_v17 = vmul.f32 %v819_v0, %v603_v9 }
  0x2f   : > { %713 = vst [vmem:[%s853_s26 + $0x58] sm:$0xff] %v666_v10   ;;  %v337_v18 = vadd.f32 %v827_v6, %v301_v11  ;;  %v338_v19 = vadd.f32 %v827_v6, %v302_v12  ;;  %v607_v20 = vunpack.c.h.bf16 %v702_v63  ;;  %v305_v21 = vmul.f32 %v819_v0, %v606_v13 }
  0x30   : > { %v368_v22 = vmax.f32 %v336_v14, 0.0  ;;  %v339_v23 = vadd.f32 %v827_v6, %v303_v16  ;;  %v340_v24 = vadd.f32 %v827_v6, %v304_v17 }
  0x31   : > { %v369_v25 = vmax.f32 %v337_v18, 0.0  ;;  %v370_v26 = vmax.f32 %v338_v19, 0.0  ;;  %v306_v27 = vmul.f32 %v819_v0, %v607_v20  ;;  %v341_v28 = vadd.f32 %v827_v6, %v305_v21 }
  0x32   : > { %v671_v29 = vpack.c.bf16 %v368_v22, %v367_v15  ;;  %v371_v30 = vmax.f32 %v339_v23, 0.0  ;;  %v372_v31 = vmax.f32 %v340_v24, 0.0 }
  0x33   : > { %v676_v32 = vpack.c.bf16 %v370_v26, %v369_v25  ;;  %v342_v33 = vadd.f32 %v827_v6, %v306_v27  ;;  %v373_v34 = vmax.f32 %v341_v28, 0.0 }
  0x34   : > { %714 = vst [vmem:[%s853_s26 + $0x60] sm:$0xff] %v671_v29   ;;  %v681_v35 = vpack.c.bf16 %v372_v31, %v371_v30 }
  0x35   : > { %715 = vst [vmem:[%s853_s26 + $0x68] sm:$0xff] %v676_v32   ;;  %v374_v36 = vmax.f32 %v342_v33, 0.0 }
  0x36   : > { %716 = vst [vmem:[%s853_s26 + $0x70] sm:$0xff] %v681_v35  }
  0x37   : > { %v686_v37 = vpack.c.bf16 %v374_v36, %v373_v34 }
  0x39   : > { %717 = vst [vmem:[%s853_s26 + $0x78] sm:$0xff] %v686_v37  }
  0x3a PF: > { %s13_s14 = sadd.s32 1, %s766_s14   ;;  %s942_s12 = smov %s762_s13 }
  0x3b   : > { %p10_p5 = scmp.ge.s32.totalorder %s13_s14, 4   ;;  %s943_s13 = smov %s945_s15 }
  0x3d   :  { %12 = sbr.rel (!%p10_p5) target bundleno = 2 (0x2), region = 62 }

// kernel: conv_relu.2
= control target key start
LH: loop header
LB: loop body
LE: loop exit
PB: predicated region body
PF: predicated region fallthrough
CT: control target
= control target key end

     0   :  { %s1715_s15 = smov 0   ;;  %s1717_s16 = smov 0   ;;  %s2115_s0 = inlined_call_operand.vmem [shape: bf16[2,1,288,12], index: 0, kind: input, shape index: {}]   ;;  %s2116_s1 = inlined_call_operand.vmem [shape: bf16[3,12,128], index: 1, kind: input, shape index: {}]   ;;  %s2117_s2 = inlined_call_operand.vmem [shape: bf16[2,1,256,128], index: 2, kind: output, shape index: {0}]   ;;  %s2118_s3 = inlined_call_operand.vmem [shape: f32[2,1,1,128], index: 3, kind: output, shape index: {1}]   ;;  %s2119_s4 = inlined_call_operand.vmem [shape: f32[2,1,1,128], index: 4, kind: output, shape index: {2}]  }
   0x1   :  { %s1719_s17 = smov 0  }
   0x2 LB: > { %s27_s18 = sadd.s32 1, %s1684_s16  ;;  %p1304_p0 = scmp.ge.s32.totalorder %s1688_s17, 1  ;;  %s1688_s17 = sphi %s1719_s17, %s15_s17   ;;  %s1684_s16 = sphi %s1717_s16, %s2121_s16   ;;  %s1680_s15 = sphi %s1715_s15, %s2120_s15  }
   0x3   : > { %p29_p1 = scmp.ge.s32.totalorder %s27_s18, 2  ;;  %p191_p2 = scmp.lt.s32.totalorder %s1688_s17, 3 }
   0x5   : > { %s2123_s18 = smov (%p29_p1, %s27_s18), 0  ;;  %p192_p3 = pnand %p1304_p0, %p191_p2 }
   0x6   : > { %p237_p4 = scmp.lt.s32.totalorder (!%p192_p3), %s1680_s15, 1 }
   0x7   : > { %195 = sbr.rel (%p192_p3) target bundleno = 452 (0x1c4), region = 28 }
   0xc   : > { %v1376_v0 = vld [vmem:[%s2116_s1 + $0x8] sm:$0xf]  ;;  %v1525_v1 = vld [vmem:[%s2116_s1 + $0x8] sm:$0x30]  ;;  %vm441_vm0 = vcmask 1045504   ;;  %s2125_s15 = smov (!%p237_p4, %s1680_s15), 1 }
   0xd   : > { %v1377_v2 = vor.u32 %v1525_v1, %v1376_v0  ;;  %v1400_v3 = vld [vmem:[%s2116_s1] sm:$0xf]  ;;  %v1523_v4 = vld [vmem:[%s2116_s1] sm:$0x30]  ;;  %v1486_v5 = vld [vmem:[%s2116_s1 + $0x10] sm:$0xf]  ;;  %s260_s19 = scalar_lea.vmem %s2118_s3, %s2125_s15  ;;  %s266_s22 = scalar_lea.vmem %s2119_s4, %s2125_s15 }
   0xe   : > { %v1401_v6 = vor.u32 %v1523_v4, %v1400_v3  ;;  %v1542_v7 = vld [vmem:[%s2116_s1 + $0x10] sm:$0x30]  ;;  %s1641_s5 = smul.u32 144, %s2125_s15  ;;  %vm392_vm1 = vcmask 97280   ;;  %s1506_s9 = sshll.u32 %s2125_s15, 7 }
   0xf   : > { %v443_v8 = vsel %vm441_vm0, %v1377_v2, 0  ;;  %v1487_v9 = vor.u32 %v1542_v7, %v1486_v5  ;;  %s1841_s12 = scalar_lea.vmem %s2117_s2, %s1506_s9 }
  0x10   : > { %452 = vmatpush.bf16.msra.mxu0 %v443_v8  ;;  %1638 = vmatpush.bf16.msra.mxu3 %v443_v8  ;;  %v548_v10 = vsel %vm441_vm0, %v1401_v6, 0  ;;  %s1760_s8 = scalar_lea.vmem %s2115_s0, %s1641_s5 }
  0x11   : > { %557 = vmatpush.bf16.msra.mxu1 %v548_v10  ;;  %v808_v11 = vsel %vm441_vm0, %v1487_v9, 0  ;;  %v1508_v12 = vld [vmem:[%s1760_s8 + $0x8] sm:$0xff]  ;;  %v1507_v14 = vld [vmem:[%s1760_s8] sm:$0xff]  ;;  %v1526_v15 = vld [vmem:[%s1760_s8 + $0x10] sm:$0xff] }
  0x12   : > { %817 = vmatpush.bf16.msra.mxu2 %v808_v11  ;;  %v1520_v13 = vld [vmem:[%s1760_s8 + $0x68] sm:$0xff]  ;;  %v1509_v16 = vld [vmem:[%s1760_s8 + $0x10] sm:$0xff]  ;;  %v1527_v18 = vld [vmem:[%s1760_s8 + $0x18] sm:$0xff] }
  0x13   : > { %1378 = vmatmul.msk.bf16.vlgmr.msra.gmra.mxu0 %vm392_vm1, %v1508_v12  ;;  %1390 = vmatmul.msk.bf16.vlgmr.msra.gmra.mxu3 %vm392_vm1, %v1520_v13  ;;  %v1521_v17 = vld [vmem:[%s1760_s8 + $0x70] sm:$0xff]  ;;  %v1510_v19 = vld [vmem:[%s1760_s8 + $0x18] sm:$0xff]  ;;  %v1528_v21 = vld [vmem:[%s1760_s8 + $0x20] sm:$0xff] }
  0x14   : > { %1639 = vmatpush.bf16.msrb.mxu3 %v548_v10  ;;  %1402 = vmatmul.msk.bf16.vlgmr.msra.gmra.mxu1 %vm392_vm1, %v1507_v14  ;;  %v1522_v20 = vld [vmem:[%s1760_s8 + $0x78] sm:$0xff]  ;;  %v1511_v22 = vld [vmem:[%s1760_s8 + $0x20] sm:$0xff]  ;;  %v1529_v24 = vld [vmem:[%s1760_s8 + $0x28] sm:$0xff] }
  0x15   : > { %1488 = vmatmul.msk.bf16.vlgmr.msra.gmra.mxu2 %vm392_vm1, %v1526_v15  ;;  %v1524_v23 = vld [vmem:[%s1760_s8 + $0x80] sm:$0xff]  ;;  %v1512_v25 = vld [vmem:[%s1760_s8 + $0x28] sm:$0xff]  ;;  %v1530_v27 = vld [vmem:[%s1760_s8 + $0x30] sm:$0xff] }
  0x16   : > { %v1793_v26 = vld [vmem:[%s1760_s8 + $0x60] sm:$0xff]  ;;  %v1513_v28 = vld [vmem:[%s1760_s8 + $0x30] sm:$0xff]  ;;  %v1531_v29 = vld [vmem:[%s1760_s8 + $0x38] sm:$0xff] }
  0x17   : > { %v1514_v30 = vld [vmem:[%s1760_s8 + $0x38] sm:$0xff]  ;;  %v1532_v31 = vld [vmem:[%s1760_s8 + $0x40] sm:$0xff]  ;;  %v1533_v33 = vld [vmem:[%s1760_s8 + $0x48] sm:$0xff] }
  0x18   : > { %1640 = vmatpush.bf16.msra.mxu3 %v808_v11  ;;  %v1515_v32 = vld [vmem:[%s1760_s8 + $0x40] sm:$0xff]  ;;  %v1516_v34 = vld [vmem:[%s1760_s8 + $0x48] sm:$0xff]  ;;  %v1538_v35 = vld [vmem:[%s1760_s8 + $0x70] sm:$0xff] }
  0x19   : > { %v1534_v37 = vld [vmem:[%s1760_s8 + $0x50] sm:$0xff]  ;;  %v1539_v48 = vld [vmem:[%s1760_s8 + $0x78] sm:$0xff]  ;;  %v1540_v0 = vld [vmem:[%s1760_s8 + $0x80] sm:$0xff] }
  0x1a   : > { %v1517_v47 = vld [vmem:[%s1760_s8 + $0x50] sm:$0xff]  ;;  %v1535_v52 = vld [vmem:[%s1760_s8 + $0x58] sm:$0xff]  ;;  %v1536_v4 = vld [vmem:[%s1760_s8 + $0x60] sm:$0xff] }
  0x1b   : > { %v1518_v63 = vld [vmem:[%s1760_s8 + $0x58] sm:$0xff]  ;;  %v1541_v15 = vld [vmem:[%s1760_s8 + $0x88] sm:$0xff] }
  0x23   : > { %1379 = vmatmul.msk.bf16.gmra.mxu0 %vm392_vm1, %v1509_v16  ;;  %1391 = vmatmul.msk.bf16.gmra.mxu3 %vm392_vm1, %v1521_v17 }
  0x24   : > { %1403 = vmatmul.msk.bf16.gmra.mxu1 %vm392_vm1, %v1508_v12 }
  0x25   : > { %1489 = vmatmul.msk.bf16.gmra.mxu2 %vm392_vm1, %v1527_v18 }
  0x33   : > { %1380 = vmatmul.msk.bf16.gmra.mxu0 %vm392_vm1, %v1510_v19  ;;  %1392 = vmatmul.msk.bf16.gmra.mxu3 %vm392_vm1, %v1522_v20 }
  0x34   : > { %1404 = vmatmul.msk.bf16.gmra.mxu1 %vm392_vm1, %v1509_v16 }
  0x35   : > { %1490 = vmatmul.msk.bf16.gmra.mxu2 %vm392_vm1, %v1528_v21 }
  0x43   : > { %1381 = vmatmul.msk.bf16.gmra.mxu0 %vm392_vm1, %v1511_v22  ;;  %1393 = vmatmul.msk.bf16.gmra.mxu3 %vm392_vm1, %v1524_v23 }
  0x44   : > { %1405 = vmatmul.msk.bf16.gmra.mxu1 %vm392_vm1, %v1510_v19  ;;  %v1537_v19 = vld [vmem:[%s1760_s8 + $0x68] sm:$0xff] }
  0x45   : > { %1491 = vmatmul.msk.bf16.gmra.mxu2 %vm392_vm1, %v1529_v24 }
  0x53   : > { %1382 = vmatmul.msk.bf16.gmra.mxu0 %vm392_vm1, %v1512_v25  ;;  %1414 = vmatmul.msk.bf16.vlgmr.msrb.gmra.mxu3 %vm392_vm1, %v1793_v26 }
  0x54   : > { %1406 = vmatmul.msk.bf16.gmra.mxu1 %vm392_vm1, %v1511_v22 }
  0x55   : > { %1492 = vmatmul.msk.bf16.gmra.mxu2 %vm392_vm1, %v1530_v27 }
  0x63   : > { %1383 = vmatmul.msk.bf16.gmra.mxu0 %vm392_vm1, %v1513_v28  ;;  %1415 = vmatmul.msk.bf16.gmra.mxu3 %vm392_vm1, %v1520_v13 }
  0x64   : > { %1407 = vmatmul.msk.bf16.gmra.mxu1 %vm392_vm1, %v1512_v25 }
  0x65   : > { %1493 = vmatmul.msk.bf16.gmra.mxu2 %vm392_vm1, %v1531_v29 }
  0x73   : > { %1384 = vmatmul.msk.bf16.gmra.mxu0 %vm392_vm1, %v1514_v30  ;;  %1416 = vmatmul.msk.bf16.gmra.mxu3 %vm392_vm1, %v1521_v17 }
  0x74   : > { %1408 = vmatmul.msk.bf16.gmra.mxu1 %vm392_vm1, %v1513_v28 }
  0x75   : > { %1494 = vmatmul.msk.bf16.gmra.mxu2 %vm392_vm1, %v1532_v31 }
  0x83   : > { %1385 = vmatmul.msk.bf16.gmra.mxu0 %vm392_vm1, %v1515_v32  ;;  %1417 = vmatmul.msk.bf16.gmra.mxu3 %vm392_vm1, %v1522_v20 }
  0x84   : > { %1409 = vmatmul.msk.bf16.gmra.mxu1 %vm392_vm1, %v1514_v30 }
  0x85   : > { %1495 = vmatmul.msk.bf16.gmra.mxu2 %vm392_vm1, %v1533_v33 }
  0x90   : > { %v454_v36 = vpop.f32.mrf.mxu0 }
  0x91   : > { %v559_v38 = vpop.f32.mrf.mxu1 }
  0x92   : > { %v560_v43 = vadd.f32 %v559_v38, %v454_v36 }
  0x93   : > { %1386 = vmatmul.msk.bf16.gmra.mxu0 %vm392_vm1, %v1516_v34  ;;  %1500 = vmatmul.msk.bf16.vlgmr.msra.gmra.mxu3 %vm392_vm1, %v1538_v35 }
  0x94   : > { %1410 = vmatmul.msk.bf16.gmra.mxu1 %vm392_vm1, %v1515_v32 }
  0x95   : > { %1496 = vmatmul.msk.bf16.gmra.mxu2 %vm392_vm1, %v1534_v37 }
  0x96   : > { %v1826_v39 = vpop.f32.mrf.mxu3 }
  0x98   : > { %v819_v40 = vpop.f32.mrf.mxu2  ;;  %v456_v41 = vpop.f32.mrf.mxu0 }
  0x99   : > { %v561_v42 = vpop.f32.mrf.mxu1  ;;  %v1833_v49 = vadd.f32 %v819_v40, %v560_v43 }
  0x9a   : > { %v562_v44 = vadd.f32 %v561_v42, %v456_v41 }
  0x9e   : > { %v1828_v45 = vpop.f32.mrf.mxu3 }
  0xa0   : > { %v821_v46 = vpop.f32.mrf.mxu2  ;;  %v459_v51 = vpop.f32.mrf.mxu0 }
  0xa1   : > { %v1835_v50 = vadd.f32 %v821_v46, %v562_v44  ;;  %v564_v53 = vpop.f32.mrf.mxu1 }
  0xa2   : > { %v565_v59 = vadd.f32 %v564_v53, %v459_v51 }
  0xa3   : > { %v1546_v54 = vpack.c.bf16 %v1835_v50, %v1833_v49  ;;  %1387 = vmatmul.msk.bf16.gmra.mxu0 %vm392_vm1, %v1517_v47  ;;  %1501 = vmatmul.msk.bf16.gmra.mxu3 %vm392_vm1, %v1539_v48 }
  0xa4   : > { %1411 = vmatmul.msk.bf16.gmra.mxu1 %vm392_vm1, %v1516_v34 }
  0xa5   : > { %1547 = vst [vmem:[%s1841_s12] sm:$0xff] %v1546_v54   ;;  %1497 = vmatmul.msk.bf16.gmra.mxu2 %vm392_vm1, %v1535_v52 }
  0xa6   : > { %v1850_v55 = vpop.f32.mrf.mxu3 }
  0xa8   : > { %v824_v56 = vpop.f32.mrf.mxu2  ;;  %v461_v57 = vpop.f32.mrf.mxu0 }
  0xa9   : > { %v566_v58 = vpop.f32.mrf.mxu1  ;;  %v1856_v1 = vadd.f32 %v824_v56, %v565_v59 }
  0xaa   : > { %v567_v60 = vadd.f32 %v566_v58, %v461_v57 }
  0xae   : > { %v1852_v61 = vpop.f32.mrf.mxu3 }
  0xb0   : > { %v826_v62 = vpop.f32.mrf.mxu2  ;;  %v464_v3 = vpop.f32.mrf.mxu0 }
  0xb1   : > { %v1858_v2 = vadd.f32 %v826_v62, %v567_v60  ;;  %v569_v5 = vpop.f32.mrf.mxu1 }
  0xb2   : > { %v570_v11 = vadd.f32 %v569_v5, %v464_v3 }
  0xb3   : > { %v1551_v6 = vpack.c.bf16 %v1858_v2, %v1856_v1  ;;  %1388 = vmatmul.msk.bf16.gmra.mxu0 %vm392_vm1, %v1518_v63  ;;  %1502 = vmatmul.msk.bf16.gmra.mxu3 %vm392_vm1, %v1540_v0 }
  0xb4   : > { %1412 = vmatmul.msk.bf16.gmra.mxu1 %vm392_vm1, %v1517_v47 }
  0xb5   : > { %1623 = vst [vmem:[%s1841_s12 + $0x8] sm:$0xff] %v1551_v6   ;;  %1498 = vmatmul.msk.bf16.gmra.mxu2 %vm392_vm1, %v1536_v4 }
  0xb6   : > { %v1868_v7 = vpop.f32.mrf.mxu3 }
  0xb8   : > { %v829_v8 = vpop.f32.mrf.mxu2  ;;  %v466_v9 = vpop.f32.mrf.mxu0 }
  0xb9   : > { %v571_v10 = vpop.f32.mrf.mxu1  ;;  %v1873_v16 = vadd.f32 %v829_v8, %v570_v11 }
  0xba   : > { %v572_v12 = vadd.f32 %v571_v10, %v466_v9 }
  0xbe   : > { %v1870_v13 = vpop.f32.mrf.mxu3 }
  0xc0   : > { %v831_v14 = vpop.f32.mrf.mxu2  ;;  %v469_v18 = vpop.f32.mrf.mxu0 }
  0xc1   : > { %v1875_v17 = vadd.f32 %v831_v14, %v572_v12  ;;  %v574_v20 = vpop.f32.mrf.mxu1 }
  0xc2   : > { %v575_v27 = vadd.f32 %v574_v20, %v469_v18 }
  0xc3   : > { %v1556_v21 = vpack.c.bf16 %v1875_v17, %v1873_v16  ;;  %1389 = vmatmul.msk.bf16.gmra.mxu0 %vm392_vm1, %v1793_v26  ;;  %1503 = vmatmul.msk.bf16.gmra.mxu3 %vm392_vm1, %v1541_v15 }
  0xc4   : > { %1413 = vmatmul.msk.bf16.gmra.mxu1 %vm392_vm1, %v1518_v63 }
  0xc5   : > { %1624 = vst [vmem:[%s1841_s12 + $0x10] sm:$0xff] %v1556_v21   ;;  %1499 = vmatmul.msk.bf16.gmra.mxu2 %vm392_vm1, %v1537_v19 }
  0xc6   : > { %v529_v22 = vpop.f32.mrf.mxu3 }
  0xc8   : > { %v834_v23 = vpop.f32.mrf.mxu2  ;;  %v471_v24 = vpop.f32.mrf.mxu0 }
  0xc9   : > { %v576_v25 = vpop.f32.mrf.mxu1  ;;  %v1888_v31 = vadd.f32 %v834_v23, %v575_v27 }
  0xca   : > { %v577_v28 = vadd.f32 %v576_v25, %v471_v24 }
  0xce   : > { %v1886_v29 = vpop.f32.mrf.mxu3 }
  0xd0   : > { %v836_v30 = vpop.f32.mrf.mxu2  ;;  %v474_v32 = vpop.f32.mrf.mxu0 }
  0xd1   : > { %v1890_v26 = vadd.f32 %v836_v30, %v577_v28  ;;  %v579_v33 = vpop.f32.mrf.mxu1 }
  0xd2   : > { %v580_v41 = vadd.f32 %v579_v33, %v474_v32 }
  0xd3   : > { %v1561_v34 = vpack.c.bf16 %v1890_v26, %v1888_v31 }
  0xd5   : > { %1625 = vst [vmem:[%s1841_s12 + $0x18] sm:$0xff] %v1561_v34  }
  0xd6   : > { %v619_v35 = vpop.f32.mrf.mxu3 }
  0xd7   : > { %v1896_v36 = vadd.f32 %v619_v35, %v1826_v39 }
  0xd8   : > { %v839_v37 = vpop.f32.mrf.mxu2  ;;  %v476_v38 = vpop.f32.mrf.mxu0 }
  0xd9   : > { %v581_v40 = vpop.f32.mrf.mxu1  ;;  %v1898_v46 = vadd.f32 %v839_v37, %v580_v41 }
  0xda   : > { %v582_v42 = vadd.f32 %v581_v40, %v476_v38 }
  0xde   : > { %v621_v43 = vpop.f32.mrf.mxu3 }
  0xe0   : > { %v841_v44 = vpop.f32.mrf.mxu2  ;;  %v479_v48 = vpop.f32.mrf.mxu0 }
  0xe1   : > { %v1900_v47 = vadd.f32 %v841_v44, %v582_v42  ;;  %v584_v51 = vpop.f32.mrf.mxu1 }
  0xe2   : > { %v585_v58 = vadd.f32 %v584_v51, %v479_v48 }
  0xe3   : > { %v1566_v52 = vpack.c.bf16 %v1900_v47, %v1898_v46 }
  0xe5   : > { %1626 = vst [vmem:[%s1841_s12 + $0x20] sm:$0xff] %v1566_v52   ;;  %v622_v52 = vadd.f32 %v621_v43, %v1828_v45 }
  0xe6   : > { %v624_v39 = vpop.f32.mrf.mxu3 }
  0xe7   : > { %v1906_v53 = vadd.f32 %v624_v39, %v1850_v55 }
  0xe8   : > { %v844_v54 = vpop.f32.mrf.mxu2  ;;  %v481_v56 = vpop.f32.mrf.mxu0 }
  0xe9   : > { %v586_v57 = vpop.f32.mrf.mxu1  ;;  %v1910_v63 = vadd.f32 %v844_v54, %v585_v58 }
  0xea   : > { %v587_v59 = vadd.f32 %v586_v57, %v481_v56 }
  0xee   : > { %v1908_v60 = vpop.f32.mrf.mxu3 }
  0xf0   : > { %v846_v62 = vpop.f32.mrf.mxu2  ;;  %v484_v3 = vpop.f32.mrf.mxu0 }
  0xf1   : > { %v1912_v0 = vadd.f32 %v846_v62, %v587_v59  ;;  %v589_v4 = vpop.f32.mrf.mxu1 }
  0xf2   : > { %v590_v11 = vadd.f32 %v589_v4, %v484_v3 }
  0xf3   : > { %v1571_v5 = vpack.c.bf16 %v1912_v0, %v1910_v63 }
  0xf5   : > { %1627 = vst [vmem:[%s1841_s12 + $0x28] sm:$0xff] %v1571_v5  }
  0xf6   : > { %v629_v55 = vpop.f32.mrf.mxu3 }
  0xf7   : > { %v1918_v6 = vadd.f32 %v629_v55, %v1868_v7 }
  0xf8   : > { %v849_v8 = vpop.f32.mrf.mxu2  ;;  %v486_v9 = vpop.f32.mrf.mxu0 }
  0xf9   : > { %v591_v10 = vpop.f32.mrf.mxu1  ;;  %v1922_v18 = vadd.f32 %v849_v8, %v590_v11 }
  0xfa   : > { %v592_v12 = vadd.f32 %v591_v10, %v486_v9 }
  0xfe   : > { %v1920_v14 = vpop.f32.mrf.mxu3 }
 0x100   : > { %v851_v15 = vpop.f32.mrf.mxu2  ;;  %v489_v20 = vpop.f32.mrf.mxu0 }
 0x101   : > { %v1924_v19 = vadd.f32 %v851_v15, %v592_v12  ;;  %v594_v21 = vpop.f32.mrf.mxu1 }
 0x102   : > { %v595_v30 = vadd.f32 %v594_v21, %v489_v20  ;;  %v627_v20 = vadd.f32 %v1908_v60, %v1852_v61 }
 0x103   : > { %v1576_v23 = vpack.c.bf16 %v1924_v19, %v1922_v18 }
 0x105   : > { %1628 = vst [vmem:[%s1841_s12 + $0x30] sm:$0xff] %v1576_v23  }
 0x106   : > { %v634_v7 = vpop.f32.mrf.mxu3 }
 0x107   : > { %v1929_v24 = vadd.f32 %v634_v7, %v529_v22 }
 0x108   : > { %v854_v25 = vpop.f32.mrf.mxu2  ;;  %v491_v27 = vpop.f32.mrf.mxu0 }
 0x109   : > { %v596_v28 = vpop.f32.mrf.mxu1  ;;  %v1933_v35 = vadd.f32 %v854_v25, %v595_v30 }
 0x10a   : > { %v597_v32 = vadd.f32 %v596_v28, %v491_v27 }
 0x10e   : > { %v1931_v33 = vpop.f32.mrf.mxu3 }
 0x110   : > { %v856_v34 = vpop.f32.mrf.mxu2  ;;  %v494_v38 = vpop.f32.mrf.mxu0 }
 0x111   : > { %v1935_v37 = vadd.f32 %v856_v34, %v597_v32  ;;  %v599_v40 = vpop.f32.mrf.mxu1 }
 0x112   : > { %v600_v51 = vadd.f32 %v599_v40, %v494_v38 }
 0x113   : > { %v1581_v41 = vpack.c.bf16 %v1935_v37, %v1933_v35 }
 0x115   : > { %1629 = vst [vmem:[%s1841_s12 + $0x38] sm:$0xff] %v1581_v41  }
 0x116   : > { %v879_v22 = vpop.f32.mrf.mxu3 }
 0x117   : > { %v1942_v56 = vadd.f32 %v879_v22, %v1896_v36  ;;  %v995_v36 = vadd.f32 %v1835_v50, %v1833_v49 }
 0x118   : > { %v859_v42 = vpop.f32.mrf.mxu2  ;;  %v496_v44 = vpop.f32.mrf.mxu0 }
 0x119   : > { %v601_v48 = vpop.f32.mrf.mxu1  ;;  %v1946_v59 = vadd.f32 %v859_v42, %v600_v51  ;;  %v996_v8 = vadd.f32 %v995_v36, %v1856_v1 }
 0x11a   : > { %v602_v39 = vadd.f32 %v601_v48, %v496_v44 }
 0x11b   : > { %v997_v11 = vadd.f32 %v996_v8, %v1858_v2 }
 0x11d   : > { %v998_v12 = vadd.f32 %v997_v11, %v1873_v16 }
 0x11e   : > { %v881_v54 = vpop.f32.mrf.mxu3 }
 0x11f   : > { %v1944_v58 = vadd.f32 %v881_v54, %v622_v52  ;;  %v999_v21 = vadd.f32 %v998_v12, %v1875_v17 }
 0x120   : > { %v861_v57 = vpop.f32.mrf.mxu2  ;;  %v499_v3 = vpop.f32.mrf.mxu0 }
 0x121   : > { %v1948_v62 = vadd.f32 %v861_v57, %v602_v39  ;;  %v1606_v4 = vpack.c.bf16 %v1944_v58, %v1942_v56  ;;  %v604_v5 = vpop.f32.mrf.mxu1  ;;  %v1000_v30 = vadd.f32 %v999_v21, %v1888_v31 }
 0x122   : > { %v605_v15 = vadd.f32 %v604_v5, %v499_v3  ;;  %v632_v3 = vadd.f32 %v1920_v14, %v1870_v13 }
 0x123   : > { %v1586_v45 = vpack.c.bf16 %v1948_v62, %v1946_v59  ;;  %1634 = vst [vmem:[%s1841_s12 + $0x60] sm:$0xff] %v1606_v4   ;;  %v1001_v40 = vadd.f32 %v1000_v30, %v1890_v26 }
 0x125   : > { %1630 = vst [vmem:[%s1841_s12 + $0x40] sm:$0xff] %v1586_v45   ;;  %v1002_v41 = vadd.f32 %v1001_v40, %v1898_v46 }
 0x126   : > { %v884_v43 = vpop.f32.mrf.mxu3 }
 0x127   : > { %v1965_v25 = vadd.f32 %v884_v43, %v1906_v53  ;;  %v1003_v22 = vadd.f32 %v1002_v41, %v1900_v47 }
 0x128   : > { %v864_v55 = vpop.f32.mrf.mxu2  ;;  %v501_v9 = vpop.f32.mrf.mxu0 }
 0x129   : > { %v606_v10 = vpop.f32.mrf.mxu1  ;;  %v1970_v32 = vadd.f32 %v864_v55, %v605_v15  ;;  %v1004_v48 = vadd.f32 %v1003_v22, %v1910_v63 }
 0x12a   : > { %v607_v23 = vadd.f32 %v606_v10, %v501_v9 }
 0x12b   : > { %v1005_v39 = vadd.f32 %v1004_v48, %v1912_v0 }
 0x12d   : > { %v1006_v54 = vadd.f32 %v1005_v39, %v1922_v18 }
 0x12e   : > { %v886_v7 = vpop.f32.mrf.mxu3 }
 0x12f   : > { %v1967_v28 = vadd.f32 %v886_v7, %v627_v20  ;;  %v1007_v4 = vadd.f32 %v1006_v54, %v1924_v19 }
 0x130   : > { %v866_v27 = vpop.f32.mrf.mxu2  ;;  %v504_v38 = vpop.f32.mrf.mxu0 }
 0x131   : > { %v1972_v34 = vadd.f32 %v866_v27, %v607_v23  ;;  %v1611_v61 = vpack.c.bf16 %v1967_v28, %v1965_v25  ;;  %v609_v60 = vpop.f32.mrf.mxu1  ;;  %v1008_v8 = vadd.f32 %v1007_v4, %v1933_v35 }
 0x132   : > { %v610_v57 = vadd.f32 %v609_v60, %v504_v38 }
 0x133   : > { %v1591_v53 = vpack.c.bf16 %v1972_v34, %v1970_v32  ;;  %1635 = vst [vmem:[%s1841_s12 + $0x68] sm:$0xff] %v1611_v61   ;;  %v1009_v20 = vadd.f32 %v1008_v8, %v1935_v37 }
 0x135   : > { %1631 = vst [vmem:[%s1841_s12 + $0x48] sm:$0xff] %v1591_v53   ;;  %v1010_v13 = vadd.f32 %v1009_v20, %v1946_v59  ;;  %v637_v53 = vadd.f32 %v1931_v33, %v1886_v29 }
 0x136   : > { %v889_v42 = vpop.f32.mrf.mxu3 }
 0x137   : > { %v927_v36 = vadd.f32 %v889_v42, %v1918_v6  ;;  %v1011_v14 = vadd.f32 %v1010_v13, %v1948_v62 }
 0x138   : > { %v869_v44 = vpop.f32.mrf.mxu2  ;;  %v506_v51 = vpop.f32.mrf.mxu0 }
 0x139   : > { %v611_v52 = vpop.f32.mrf.mxu1  ;;  %v919_v9 = vadd.f32 %v869_v44, %v610_v57  ;;  %v1012_v7 = vadd.f32 %v1011_v14, %v1970_v32 }
 0x13a   : > { %v612_v5 = vadd.f32 %v611_v52, %v506_v51 }
 0x13b   : > { %v1013_v30 = vadd.f32 %v1012_v7, %v1972_v34 }
 0x13d   : > { %v1014_v60 = vadd.f32 %v1013_v30, %v919_v9 }
 0x13e   : > { %v891_v45 = vpop.f32.mrf.mxu3 }
 0x13f   : > { %v928_v55 = vadd.f32 %v891_v45, %v632_v3 }
 0x140   : > { %v871_v43 = vpop.f32.mrf.mxu2  ;;  %v509_v12 = vpop.f32.mrf.mxu0 }
 0x141   : > { %v920_v10 = vadd.f32 %v871_v43, %v612_v5  ;;  %v1616_v11 = vpack.c.bf16 %v928_v55, %v927_v36  ;;  %v614_v15 = vpop.f32.mrf.mxu1 }
 0x142   : > { %v615_v27 = vadd.f32 %v614_v15, %v509_v12 }
 0x143   : > { %v1596_v21 = vpack.c.bf16 %v920_v10, %v919_v9  ;;  %1636 = vst [vmem:[%s1841_s12 + $0x70] sm:$0xff] %v1616_v11   ;;  %v1015_v41 = vadd.f32 %v1014_v60, %v920_v10 }
 0x145   : > { %1632 = vst [vmem:[%s1841_s12 + $0x50] sm:$0xff] %v1596_v21  }
 0x146   : > { %v894_v23 = vpop.f32.mrf.mxu3 }
 0x147   : > { %v929_v44 = vadd.f32 %v894_v23, %v1929_v24 }
 0x148   : > { %v874_v6 = vpop.f32.mrf.mxu2  ;;  %v511_v38 = vpop.f32.mrf.mxu0 }
 0x149   : > { %v616_v61 = vpop.f32.mrf.mxu1  ;;  %v921_v40 = vadd.f32 %v874_v6, %v615_v27 }
 0x14a   : > { %v617_v22 = vadd.f32 %v616_v61, %v511_v38 }
 0x14b   : > { %v1016_v52 = vadd.f32 %v1015_v41, %v921_v40 }
 0x14e   : > { %v896_v42 = vpop.f32.mrf.mxu3 }
 0x14f   : > { %v930_v51 = vadd.f32 %v896_v42, %v637_v53 }
 0x150   : > { %v876_v48 = vpop.f32.mrf.mxu2 }
 0x151   : > { %v922_v39 = vadd.f32 %v876_v48, %v617_v22  ;;  %v1621_v54 = vpack.c.bf16 %v930_v51, %v929_v44 }
 0x153   : > { %v1601_v57 = vpack.c.bf16 %v922_v39, %v921_v40  ;;  %v1017_v3 = vadd.f32 %v1016_v52, %v922_v39  ;;  %1637 = vst [vmem:[%s1841_s12 + $0x78] sm:$0xff] %v1621_v54  }
 0x155   : > { %1633 = vst [vmem:[%s1841_s12 + $0x58] sm:$0xff] %v1601_v57   ;;  %v1018_v4 = vadd.f32 %v1017_v3, %v1942_v56 }
 0x157   : > { %v1019_v5 = vadd.f32 %v1018_v4, %v1944_v58 }
 0x159   : > { %v1020_v29 = vadd.f32 %v1019_v5, %v1965_v25 }
 0x15b   : > { %v1021_v33 = vadd.f32 %v1020_v29, %v1967_v28 }
 0x15d   : > { %v1022_v45 = vadd.f32 %v1021_v33, %v927_v36 }
 0x15f   : > { %v1023_v24 = vadd.f32 %v1022_v45, %v928_v55 }
 0x161   : > { %v1024_v43 = vadd.f32 %v1023_v24, %v929_v44 }
 0x163   : > { %v1025_v8 = vadd.f32 %v1024_v43, %v930_v51 }
 0x165   : > { %v1026_v11 = vrot.slane %v1025_v8, 4 }
 0x167   : > { %v1027_v12 = vadd.f32 %v1026_v11, %v1025_v8 }
 0x169   : > { %v1028_v15 = vrot.slane %v1027_v12, 2 }
 0x16b   : > { %v1029_v20 = vadd.f32 %v1028_v15, %v1027_v12 }
 0x16d   : > { %v1030_v21 = vrot.slane %v1029_v20, 1 }
 0x16f   : > { %v1031_v13 = vadd.f32 %v1030_v21, %v1029_v20 }
 0x171   : > { %v2011_v14 = vmul.f32 0.00390625, %v1031_v13 }
 0x173   : > { %1136 = vst [vmem:[%s260_s19] sm:$0x1] %v2011_v14  ;;  %v2015_v23 = vsub.f32 %v919_v9, %v2011_v14  ;;  %v2018_v6 = vsub.f32 %v920_v10, %v2011_v14  ;;  %v2021_v7 = vsub.f32 %v921_v40, %v2011_v14  ;;  %v2024_v27 = vsub.f32 %v922_v39, %v2011_v14 }
 0x174   : > { %v2027_v30 = vsub.f32 %v927_v36, %v2011_v14  ;;  %v2030_v38 = vsub.f32 %v928_v55, %v2011_v14  ;;  %v2033_v61 = vsub.f32 %v929_v44, %v2011_v14  ;;  %v2036_v9 = vsub.f32 %v930_v51, %v2011_v14 }
 0x175   : > { %v1034_v10 = vsub.f32 %v1833_v49, %v2011_v14  ;;  %v1035_v60 = vsub.f32 %v1835_v50, %v2011_v14  ;;  %v1036_v40 = vsub.f32 %v1856_v1, %v2011_v14  ;;  %v1037_v55 = vsub.f32 %v1858_v2, %v2011_v14 }
 0x176   : > { %v1038_v41 = vsub.f32 %v1873_v16, %v2011_v14  ;;  %v1039_v44 = vsub.f32 %v1875_v17, %v2011_v14  ;;  %v1040_v50 = vsub.f32 %v1888_v31, %v2011_v14  ;;  %v1041_v52 = vsub.f32 %v1890_v26, %v2011_v14 }
 0x177   : > { %v1066_v36 = vmul.f32 %v1034_v10, %v1034_v10  ;;  %v1067_v53 = vmul.f32 %v1035_v60, %v1035_v60  ;;  %v1068_v22 = vmul.f32 %v1036_v40, %v1036_v40  ;;  %v1069_v49 = vmul.f32 %v1037_v55, %v1037_v55 }
 0x178   : > { %v1070_v51 = vmul.f32 %v1038_v41, %v1038_v41  ;;  %v1071_v39 = vmul.f32 %v1039_v44, %v1039_v44  ;;  %v1042_v16 = vsub.f32 %v1898_v46, %v2011_v14  ;;  %v1072_v54 = vmul.f32 %v1040_v50, %v1040_v50 }
 0x179   : > { %v1098_v42 = vadd.f32 %v1067_v53, %v1066_v36  ;;  %v1043_v17 = vsub.f32 %v1900_v47, %v2011_v14  ;;  %v1073_v3 = vmul.f32 %v1041_v52, %v1041_v52  ;;  %v1044_v31 = vsub.f32 %v1910_v63, %v2011_v14 }
 0x17a   : > { %v1074_v5 = vmul.f32 %v1042_v16, %v1042_v16  ;;  %v1045_v26 = vsub.f32 %v1912_v0, %v2011_v14  ;;  %v1046_v46 = vsub.f32 %v1922_v18, %v2011_v14  ;;  %v1047_v47 = vsub.f32 %v1924_v19, %v2011_v14 }
 0x17b   : > { %v1099_v48 = vadd.f32 %v1098_v42, %v1068_v22  ;;  %v1075_v33 = vmul.f32 %v1043_v17, %v1043_v17  ;;  %v1076_v24 = vmul.f32 %v1044_v31, %v1044_v31  ;;  %v1048_v63 = vsub.f32 %v1933_v35, %v2011_v14 }
 0x17c   : > { %v1077_v8 = vmul.f32 %v1045_v26, %v1045_v26  ;;  %v1078_v12 = vmul.f32 %v1046_v46, %v1046_v46  ;;  %v1049_v0 = vsub.f32 %v1935_v37, %v2011_v14  ;;  %v1079_v20 = vmul.f32 %v1047_v47, %v1047_v47 }
 0x17d   : > { %v1100_v1 = vadd.f32 %v1099_v48, %v1069_v49  ;;  %v1050_v18 = vsub.f32 %v1946_v59, %v2011_v14  ;;  %v1080_v13 = vmul.f32 %v1048_v63, %v1048_v63  ;;  %v1051_v19 = vsub.f32 %v1948_v62, %v2011_v14 }
 0x17e   : > { %v1081_v60 = vmul.f32 %v1049_v0, %v1049_v0  ;;  %v1052_v35 = vsub.f32 %v1970_v32, %v2011_v14  ;;  %v1053_v37 = vsub.f32 %v1972_v34, %v2011_v14  ;;  %v1086_v49 = vmul.f32 %v2015_v23, %v2015_v23 }
 0x17f   : > { %v1101_v2 = vadd.f32 %v1100_v1, %v1070_v51  ;;  %v1082_v36 = vmul.f32 %v1050_v18, %v1050_v18  ;;  %v1083_v55 = vmul.f32 %v1051_v19, %v1051_v19  ;;  %v1087_v48 = vmul.f32 %v2018_v6, %v2018_v6 }
 0x180   : > { %v1084_v22 = vmul.f32 %v1052_v35, %v1052_v35  ;;  %v1085_v59 = vmul.f32 %v1053_v37, %v1053_v37  ;;  %v1058_v32 = vsub.f32 %v1942_v56, %v2011_v14  ;;  %v1088_v34 = vmul.f32 %v2021_v7, %v2021_v7 }
 0x181   : > { %v1102_v57 = vadd.f32 %v1101_v2, %v1071_v39  ;;  %v1059_v1 = vsub.f32 %v1944_v58, %v2011_v14  ;;  %v1089_v52 = vmul.f32 %v2024_v27, %v2024_v27  ;;  %v1060_v23 = vsub.f32 %v1965_v25, %v2011_v14 }
 0x182   : > { %v1090_v2 = vmul.f32 %v1058_v32, %v1058_v32  ;;  %v1061_v16 = vsub.f32 %v1967_v28, %v2011_v14  ;;  %v1094_v58 = vmul.f32 %v2027_v30, %v2027_v30  ;;  %v1096_v31 = vmul.f32 %v2033_v61, %v2033_v61 }
 0x183   : > { %v1103_v4 = vadd.f32 %v1102_v57, %v1072_v54  ;;  %v1091_v56 = vmul.f32 %v1059_v1, %v1059_v1  ;;  %v1092_v57 = vmul.f32 %v1060_v23, %v1060_v23  ;;  %v1097_v28 = vmul.f32 %v2036_v9, %v2036_v9 }
 0x184   : > { %v1093_v17 = vmul.f32 %v1061_v16, %v1061_v16 }
 0x185   : > { %v1104_v29 = vadd.f32 %v1103_v4, %v1073_v3  ;;  %v1095_v4 = vmul.f32 %v2030_v38, %v2030_v38 }
 0x187   : > { %v1105_v45 = vadd.f32 %v1104_v29, %v1074_v5 }
 0x189   : > { %v1106_v43 = vadd.f32 %v1105_v45, %v1075_v33 }
 0x18b   : > { %v1107_v11 = vadd.f32 %v1106_v43, %v1076_v24 }
 0x18d   : > { %v1108_v15 = vadd.f32 %v1107_v11, %v1077_v8 }
 0x18f   : > { %v1109_v21 = vadd.f32 %v1108_v15, %v1078_v12 }
 0x191   : > { %v1110_v10 = vadd.f32 %v1109_v21, %v1079_v20 }
 0x193   : > { %v1111_v40 = vadd.f32 %v1110_v10, %v1080_v13 }
 0x195   : > { %v1112_v53 = vadd.f32 %v1111_v40, %v1081_v60 }
 0x197   : > { %v1113_v41 = vadd.f32 %v1112_v53, %v1082_v36 }
 0x199   : > { %v1114_v42 = vadd.f32 %v1113_v41, %v1083_v55 }
 0x19b   : > { %v1115_v44 = vadd.f32 %v1114_v42, %v1084_v22 }
 0x19d   : > { %v1116_v62 = vadd.f32 %v1115_v44, %v1085_v59 }
 0x19f   : > { %v1117_v50 = vadd.f32 %v1116_v62, %v1086_v49 }
 0x1a1   : > { %v1118_v51 = vadd.f32 %v1117_v50, %v1087_v48 }
 0x1a3   : > { %v1119_v39 = vadd.f32 %v1118_v51, %v1088_v34 }
 0x1a5   : > { %v1120_v6 = vadd.f32 %v1119_v39, %v1089_v52 }
 0x1a7   : > { %v1121_v54 = vadd.f32 %v1120_v6, %v1090_v2 }
 0x1a9   : > { %v1122_v7 = vadd.f32 %v1121_v54, %v1091_v56 }
 0x1ab   : > { %v1123_v3 = vadd.f32 %v1122_v7, %v1092_v57 }
 0x1ad   : > { %v1124_v27 = vadd.f32 %v1123_v3, %v1093_v17 }
 0x1af   : > { %v1125_v25 = vadd.f32 %v1124_v27, %v1094_v58 }
 0x1b1   : > { %v1126_v5 = vadd.f32 %v1125_v25, %v1095_v4 }
 0x1b3   : > { %v1127_v14 = vadd.f32 %v1126_v5, %v1096_v31 }
 0x1b5   : > { %v1128_v29 = vadd.f32 %v1127_v14, %v1097_v28 }
 0x1b7   : > { %v1129_v26 = vrot.slane %v1128_v29, 4 }
 0x1b9   : > { %v1130_v33 = vadd.f32 %v1129_v26, %v1128_v29 }
 0x1bb   : > { %v1131_v45 = vrot.slane %v1130_v33, 2 }
 0x1bd   : > { %v1132_v46 = vadd.f32 %v1131_v45, %v1130_v33 }
 0x1bf   : > { %v1133_v24 = vrot.slane %v1132_v46, 1 }
 0x1c1   : > { %v1134_v30 = vadd.f32 %v1133_v24, %v1132_v46 }
 0x1c3   : > { %1137 = vst [vmem:[%s266_s22] sm:$0x1] %v1134_v30 }
 0x1c4 PF: > { %s15_s17 = sadd.s32 1, %s1688_s17   ;;  %s2120_s15 = smov %s1684_s16 }
 0x1c5   : > { %p12_p5 = scmp.ge.s32.totalorder %s15_s17, 4   ;;  %s2121_s16 = smov %s2123_s18 }
 0x1c7   :  { %14 = sbr.rel (!%p12_p5) target bundleno = 2 (0x2), region = 84 }

</bundles_post_ra>
